<compile_context>
chip_gen: v7x
topology: tpu7x:2x2x1
jax: 0.10.0
libtpu: 0.0.40
codegen_flags: <defaults>
</compile_context>

<pallas_src>
import functools

import jax
import jax.numpy as jnp
from jax.experimental import pallas as pl
from jax.experimental.pallas import tpu as pltpu


def _resblock_kernel(x_ref, sp1_ref, sh_ref, w0_ref, wcat_ref, bcat_ref, o_ref):
    # x_ref:    (1, Nt, Cin)      bf16
    # sp1_ref:  (1, 1, H)         f32   (scale + 1, per batch)
    # sh_ref:   (1, 1, H)         f32   (shift + b0*(scale+1), per batch)
    # w0_ref:   (Cin, H)          bf16
    # wcat_ref: (Cin+H, Cout_p)   bf16  (vstack([ws, w1]) zero-padded on lanes)
    # bcat_ref: (1, Cout_p)       f32
    # o_ref:    (1, Nt, Cout_p)   f32
    x = x_ref[0]                                               # (Nt, Cin) bf16

    # net = fc_0(relu(x)) with bias folded into the fused shift.
    h = jnp.maximum(x, 0)                                      # bf16 ReLU
    net = jnp.dot(h, w0_ref[...],
                  preferred_element_type=jnp.float32)          # (Nt, H) f32
    net = net * sp1_ref[0] + sh_ref[0]                         # broadcast over rows

    # Fused fc_1 + shortcut: one K = Cin + H matmul into a lane-dense output.
    h2 = jnp.maximum(net, 0.0).astype(jnp.bfloat16)            # (Nt, H) bf16
    cat = jnp.concatenate([x, h2], axis=-1)                    # (Nt, Cin+H) bf16
    out = jnp.dot(cat, wcat_ref[...],
                  preferred_element_type=jnp.float32) + bcat_ref[...]
    o_ref[0] = out                                             # (Nt, Cout_p) f32


def resnet_block_fc_time_embed(x, time_emb, params, *, n_tile_max=512):
    """x: (B, N, size_in) f32, time_emb: (B, time_emb_dim) f32 -> (B, N, size_out) f32."""
    B, N, Cin = x.shape
    w0, b0, w1, b1, ws, wt, bt = (params[k] for k in
                                  ("w0", "b0", "w1", "b1", "ws", "wt", "bt"))
    H = w0.shape[1]
    Cout = w1.shape[1]
    Cout_p = ((Cout + 127) // 128) * 128                       # lane-dense output width

    # --- hoisted time-embedding MLP (independent of N; tiny, let XLA do it) ---
    t = time_emb * jax.nn.sigmoid(time_emb)                    # SiLU
    tproj = t @ wt + bt                                        # (B, 2H) f32
    sp1 = tproj[:, :H] + 1.0                                   # scale + 1
    shift2 = b0 * sp1 + tproj[:, H:]                           # fold fc_0 bias into shift
    sp1 = sp1.reshape(B, 1, H)
    shift2 = shift2.reshape(B, 1, H)

    # --- fuse fc_1 + shortcut into one stacked, lane-padded weight ---
    wcat = jnp.concatenate([ws, w1], axis=0)                   # (Cin+H, Cout)
    wcat = jnp.pad(wcat, ((0, 0), (0, Cout_p - Cout)))
    bcat = jnp.pad(b1, ((0, 0), (0, Cout_p - Cout)))           # (1, Cout_p)

    # bf16 matmul operands, f32 accumulate in-kernel.
    x_bf = x.astype(jnp.bfloat16)
    w0_bf = w0.astype(jnp.bfloat16)
    wcat_bf = wcat.astype(jnp.bfloat16)

    # --- row tiling over N (second "parallel" axis keeps both v7x TCs busy) ---
    if N <= n_tile_max:
        n_tile, n_pad = N, N                                   # full-dim block is legal
    else:
        n_tile = n_tile_max                                    # multiple of 8
        n_pad = ((N + n_tile - 1) // n_tile) * n_tile
        x_bf = jnp.pad(x_bf, ((0, 0), (0, n_pad - N), (0, 0)))
    n_steps = n_pad // n_tile

    full = lambda shape: pl.BlockSpec(shape, lambda b, nt: tuple(0 for _ in shape))

    grid_spec = pltpu.PrefetchScalarGridSpec(
        num_scalar_prefetch=0,
        grid=(B, n_steps),
        in_specs=[
            pl.BlockSpec((1, n_tile, Cin), lambda b, nt: (b, nt, 0)),   # x tile
            pl.BlockSpec((1, 1, H), lambda b, nt: (b, 0, 0)),           # scale+1
            pl.BlockSpec((1, 1, H), lambda b, nt: (b, 0, 0)),           # fused shift
            full(w0_bf.shape),
            full(wcat_bf.shape),
            full(bcat.shape),
        ],
        out_specs=pl.BlockSpec((1, n_tile, Cout_p), lambda b, nt: (b, nt, 0)),
    )

    out = pl.pallas_call(
        _resblock_kernel,
        out_shape=jax.ShapeDtypeStruct((B, n_pad, Cout_p), jnp.float32),
        grid_spec=grid_spec,
        compiler_params=pltpu.CompilerParams(
            dimension_semantics=("parallel", "parallel"),
            # Tiles at n_tile<=512 keep double-buffered x/out + weights well
            # under this on every generation (incl. v7x's 64 MiB physical VMEM).
            vmem_limit_bytes=32 * 1024 * 1024,
        ),
    )(x_bf, sp1, shift2, w0_bf, wcat_bf, bcat)

    return out[:, :N, :Cout]


def reference_forward(x, time_emb, params):
    """Pure-JAX reference using the same bf16-operand / f32-accumulate strategy."""
    w0, b0, w1, b1, ws, wt, bt = (params[k] for k in
                                  ("w0", "b0", "w1", "b1", "ws", "wt", "bt"))
    H = w0.shape[1]
    t = time_emb * jax.nn.sigmoid(time_emb)
    tp = t @ wt + bt
    sp1 = tp[:, :H] + 1.0
    shift2 = b0 * sp1 + tp[:, H:]

    x_bf = x.astype(jnp.bfloat16)
    h = jnp.maximum(x_bf, 0)
    net = jnp.einsum('bnc,ch->bnh', h, w0.astype(jnp.bfloat16),
                     preferred_element_type=jnp.float32)
    net = net * sp1[:, None, :] + shift2[:, None, :]
    h2 = jnp.maximum(net, 0.0).astype(jnp.bfloat16)
    cat = jnp.concatenate([x_bf, h2], axis=-1)
    wcat = jnp.concatenate([ws, w1], axis=0).astype(jnp.bfloat16)
    out = jnp.einsum('bnk,ko->bno', cat, wcat,
                     preferred_element_type=jnp.float32) + b1
    return out


def init_params(key, size_in, size_out, size_h, time_emb_dim):
    ks = jax.random.split(key, 6)
    # kaiming_normal fan_in (a=0): std = sqrt(2 / fan_in)
    w0 = jax.random.normal(ks[0], (size_in, size_h), jnp.float32) * jnp.sqrt(2.0 / size_in)
    b0 = jnp.zeros((1, size_h), jnp.float32)
    # module zero-inits fc_1.weight; small random values exercise the path
    w1 = jax.random.normal(ks[1], (size_h, size_out), jnp.float32) * 0.02
    b1 = jnp.zeros((1, size_out), jnp.float32)
    ws = jax.random.normal(ks[2], (size_in, size_out), jnp.float32) * jnp.sqrt(2.0 / size_in)
    # torch default Linear init: uniform(-1/sqrt(fan_in), 1/sqrt(fan_in))
    bound = 1.0 / jnp.sqrt(time_emb_dim)
    wt = jax.random.uniform(ks[3], (time_emb_dim, 2 * size_h), jnp.float32, -bound, bound)
    bt = jax.random.uniform(ks[4], (1, 2 * size_h), jnp.float32, -bound, bound)
    return dict(w0=w0, b0=b0, w1=w1, b1=b1, ws=ws, wt=wt, bt=bt)


if __name__ == "__main__":
    B, N = 2, 64
    size_in, size_out, size_h, time_emb_dim = 32, 48, 32, 16

    key = jax.random.PRNGKey(0)
    kx, kt, kp = jax.random.split(key, 3)
    x = jax.random.normal(kx, (B, N, size_in), jnp.float32)
    time_emb = jax.random.normal(kt, (B, time_emb_dim), jnp.float32)
    params = init_params(kp, size_in, size_out, size_h, time_emb_dim)

    out = resnet_block_fc_time_embed(x, time_emb, params)
    out = jax.block_until_ready(out)

    ref = reference_forward(x, time_emb, params)
    assert out.shape == (B, N, size_out)
    assert jnp.allclose(out, ref, atol=1e-3, rtol=1e-3), "mismatch vs JAX reference"

    print("KERNEL_OK")
</pallas_src>

<mosaic_0001>
module attributes {stable_mosaic.version = 11 : i64} {
  func.func @_resblock_kernel(%arg0: i32, %arg1: i32, %arg2: memref<1x64x32xbf16, #tpu.memory_space<vmem>>, %arg3: memref<1x1x32xf32, #tpu.memory_space<vmem>>, %arg4: memref<1x1x32xf32, #tpu.memory_space<vmem>>, %arg5: memref<32x32xbf16, #tpu.memory_space<vmem>>, %arg6: memref<64x128xbf16, #tpu.memory_space<vmem>>, %arg7: memref<1x128xf32, #tpu.memory_space<vmem>>, %arg8: memref<1x64x128xf32, #tpu.memory_space<vmem>>) attributes {dimension_semantics = [#tpu.dimension_semantics<parallel>, #tpu.dimension_semantics<parallel>], iteration_bounds = array<i64: 2, 1>, scalar_prefetch = 0 : i64, scratch_operands = 0 : i64, tpu.core_type = #tpu.core_type<tc>, window_params = [{transform_indices = @transform_0, window_bounds = array<i64: 1, 64, 32>}, {transform_indices = @transform_1, window_bounds = array<i64: 1, 1, 32>}, {transform_indices = @transform_2, window_bounds = array<i64: 1, 1, 32>}, {pipeline_mode = #tpu.pipeline_mode<synchronous>, transform_indices = @transform_3, window_bounds = array<i64: 32, 32>}, {pipeline_mode = #tpu.pipeline_mode<synchronous>, transform_indices = @transform_4, window_bounds = array<i64: 64, 128>}, {pipeline_mode = #tpu.pipeline_mode<synchronous>, transform_indices = @transform_5, window_bounds = array<i64: 1, 128>}, {transform_indices = @transform_6, window_bounds = array<i64: 1, 64, 128>}]} {
    %c0 = arith.constant 0 : index
    %c0_0 = arith.constant 0 : index
    %c0_1 = arith.constant 0 : index
    %0 = vector.load %arg2[%c0, %c0_0, %c0_1] : memref<1x64x32xbf16, #tpu.memory_space<vmem>>, vector<1x64x32xbf16>
    %1 = vector.shape_cast %0 : vector<1x64x32xbf16> to vector<64x32xbf16>
    %cst = arith.constant 0.000000e+00 : bf16
    %2 = vector.broadcast %cst : bf16 to vector<64x32xbf16>
    %3 = arith.maximumf %1, %2 : vector<64x32xbf16>
    %c0_2 = arith.constant 0 : index
    %c0_3 = arith.constant 0 : index
    %4 = vector.load %arg5[%c0_2, %c0_3] : memref<32x32xbf16, #tpu.memory_space<vmem>>, vector<32x32xbf16>
    %cst_4 = arith.constant dense<0.000000e+00> : vector<64x32xf32>
    %5 = tpu.matmul %3, %4, %cst_4 {dimension_numbers = #tpu.dot_dimension_numbers<[1], [0], [0], [1], [0, 0, 1, 1], [], []>} : vector<64x32xbf16>, vector<32x32xbf16>, vector<64x32xf32> -> vector<64x32xf32>
    %c0_5 = arith.constant 0 : index
    %c0_6 = arith.constant 0 : index
    %c0_7 = arith.constant 0 : index
    %6 = vector.load %arg3[%c0_5, %c0_6, %c0_7] : memref<1x1x32xf32, #tpu.memory_space<vmem>>, vector<1x1x32xf32>
    %7 = vector.shape_cast %6 : vector<1x1x32xf32> to vector<1x32xf32>
    %8 = vector.broadcast %7 : vector<1x32xf32> to vector<64x32xf32>
    %9 = arith.mulf %5, %8 : vector<64x32xf32>
    %c0_8 = arith.constant 0 : index
    %c0_9 = arith.constant 0 : index
    %c0_10 = arith.constant 0 : index
    %10 = vector.load %arg4[%c0_8, %c0_9, %c0_10] : memref<1x1x32xf32, #tpu.memory_space<vmem>>, vector<1x1x32xf32>
    %11 = vector.shape_cast %10 : vector<1x1x32xf32> to vector<1x32xf32>
    %12 = vector.broadcast %11 : vector<1x32xf32> to vector<64x32xf32>
    %13 = arith.addf %9, %12 : vector<64x32xf32>
    %cst_11 = arith.constant 0.000000e+00 : f32
    %14 = vector.broadcast %cst_11 : f32 to vector<64x32xf32>
    %15 = arith.maximumf %13, %14 : vector<64x32xf32>
    %16 = arith.truncf %15 : vector<64x32xf32> to vector<64x32xbf16>
    %17 = tpu.concatenate %1, %16 in 1 : vector<64x32xbf16>, vector<64x32xbf16> -> vector<64x64xbf16>
    %c0_12 = arith.constant 0 : index
    %c0_13 = arith.constant 0 : index
    %18 = vector.load %arg6[%c0_12, %c0_13] : memref<64x128xbf16, #tpu.memory_space<vmem>>, vector<64x128xbf16>
    %cst_14 = arith.constant dense<0.000000e+00> : vector<64x128xf32>
    %19 = tpu.matmul %17, %18, %cst_14 {dimension_numbers = #tpu.dot_dimension_numbers<[1], [0], [0], [1], [0, 0, 1, 1], [], []>} : vector<64x64xbf16>, vector<64x128xbf16>, vector<64x128xf32> -> vector<64x128xf32>
    %c0_15 = arith.constant 0 : index
    %c0_16 = arith.constant 0 : index
    %20 = vector.load %arg7[%c0_15, %c0_16] : memref<1x128xf32, #tpu.memory_space<vmem>>, vector<1x128xf32>
    %21 = vector.broadcast %20 : vector<1x128xf32> to vector<64x128xf32>
    %22 = arith.addf %19, %21 : vector<64x128xf32>
    %c0_17 = arith.constant 0 : index
    %c0_18 = arith.constant 0 : index
    %c0_19 = arith.constant 0 : index
    %23 = vector.load %arg8[%c0_17, %c0_18, %c0_19] : memref<1x64x128xf32, #tpu.memory_space<vmem>>, vector<1x64x128xf32>
    %24 = vector.shape_cast %23 : vector<1x64x128xf32> to vector<64x128xf32>
    %25 = vector.shape_cast %22 : vector<64x128xf32> to vector<1x64x128xf32>
    tpu.vector_store %arg8[%c0_17, %c0_18, %c0_19], %25 {strides = array<i32>} : memref<1x64x128xf32, #tpu.memory_space<vmem>>, vector<1x64x128xf32>,
    return
  }
  func.func @transform_0(%arg0: i32, %arg1: i32) -> (i32, i32, i32) {
    %c0_i32 = arith.constant 0 : i32
    %c0_i32_0 = arith.constant 0 : i32
    return %arg0, %arg1, %c0_i32 : i32, i32, i32
  }
  func.func @transform_1(%arg0: i32, %arg1: i32) -> (i32, i32, i32) {
    %c0_i32 = arith.constant 0 : i32
    %c0_i32_0 = arith.constant 0 : i32
    %c0_i32_1 = arith.constant 0 : i32
    return %arg0, %c0_i32, %c0_i32_0 : i32, i32, i32
  }
  func.func @transform_2(%arg0: i32, %arg1: i32) -> (i32, i32, i32) {
    %c0_i32 = arith.constant 0 : i32
    %c0_i32_0 = arith.constant 0 : i32
    %c0_i32_1 = arith.constant 0 : i32
    return %arg0, %c0_i32, %c0_i32_0 : i32, i32, i32
  }
  func.func @transform_3(%arg0: i32, %arg1: i32) -> (i32, i32) {
    %c0_i32 = arith.constant 0 : i32
    %c0_i32_0 = arith.constant 0 : i32
    %c0_i32_1 = arith.constant 0 : i32
    return %c0_i32, %c0_i32_0 : i32, i32
  }
  func.func @transform_4(%arg0: i32, %arg1: i32) -> (i32, i32) {
    %c0_i32 = arith.constant 0 : i32
    %c0_i32_0 = arith.constant 0 : i32
    %c0_i32_1 = arith.constant 0 : i32
    return %c0_i32, %c0_i32_0 : i32, i32
  }
  func.func @transform_5(%arg0: i32, %arg1: i32) -> (i32, i32) {
    %c0_i32 = arith.constant 0 : i32
    %c0_i32_0 = arith.constant 0 : i32
    %c0_i32_1 = arith.constant 0 : i32
    return %c0_i32, %c0_i32_0 : i32, i32
  }
  func.func @transform_6(%arg0: i32, %arg1: i32) -> (i32, i32, i32) {
    %c0_i32 = arith.constant 0 : i32
    %c0_i32_0 = arith.constant 0 : i32
    return %arg0, %arg1, %c0_i32 : i32, i32, i32
  }
}

</mosaic_0001>

<bundles_post_ra>
// kernel: tpu_custom_call.1
= control target key start
LH: loop header
LB: loop body
LE: loop exit
PB: predicated region body
PF: predicated region fallthrough
CT: control target
= control target key end

     0   :  { %11 = vsyncpa [#allocation3], 0  ;;  %s1222_s0 = inlined_call_operand.vmem [shape: bf16[2,64,32], index: 0, kind: input, shape index: {}]   ;;  %s1223_s1 = inlined_call_operand.vmem [shape: f32[2,1,32], index: 1, kind: input, shape index: {}]   ;;  %s1224_s2 = inlined_call_operand.vmem [shape: f32[2,1,32], index: 2, kind: input, shape index: {}]   ;;  %s1225_s3 = inlined_call_operand.vmem [shape: bf16[32,32], index: 3, kind: input, shape index: {}]   ;;  %s1226_s4 = inlined_call_operand.vmem [shape: bf16[64,128], index: 4, kind: input, shape index: {}]   ;;  %s1227_s5 = inlined_call_operand.vmem [shape: f32[1,128], index: 5, kind: input, shape index: {}]   ;;  %s1228_s6 = inlined_call_operand.hbm [shape: f32[2,64,128], index: 6, kind: output, shape index: {}]  }
   0x1   :  { %13 = vsyncpa [#allocation3 + $0x1], 0  ;;  %s1031_s21 = smov 0   ;;  %s1033_s22 = smov 0  }
   0x2   :  { %s1035_s23 = smov 0   ;;  %s1037_s24 = smov 0  }
   0x3   :  { %s1039_s25 = smov 0   ;;  %s1041_s26 = smov 0  }
   0x4 LB: > { %s760_s27 = sadd.s32 4294967295, %s989_s26   ;;  %s761_s28 = sadd.s32 4294967294, %s989_s26   ;;  %s989_s26 = sphi %s1041_s26, %s19_s26   ;;  %s985_s25 = sphi %s1039_s25, %s1235_s25   ;;  %s981_s24 = sphi %s1037_s24, %s1234_s24   ;;  %s977_s23 = sphi %s1035_s23, %s1233_s23   ;;  %s973_s22 = sphi %s1033_s22, %s1232_s22   ;;  %s969_s21 = sphi %s1031_s21, %s1231_s21  }
   0x5   : > { %s31_s29 = sadd.s32 1, %s985_s25  ;;  %s183_s30 = sadd.s32 1, %s977_s23 }
   0x6   : > { %p33_p0 = scmp.ge.s32.totalorder %s31_s29, 2  ;;  %p193_p1 = scmp.ne.s32.totalorder %s977_s23, %s973_s22 }
   0x7   : > { %p194_p2 = scmp.eq.s32.totalorder %s760_s27, 1  ;;  %p199_p3 = scmp.ne.s32.totalorder %s973_s22, %s969_s21 }
   0x8   : > { %s1237_s29 = smov (%p33_p0, %s31_s29), 0  ;;  %p200_p5 = scmp.eq.s32.totalorder %s761_s28, 1 }
   0x9   : > { %p1071_p4 = por %p194_p2, %p193_p1  ;;  %s178_s8 = ssub.s32 %s985_s25, %s1237_s29 }
   0xa   : > { %p764_p6 = scmp.ge.s32.totalorder %s989_s26, 1  ;;  %p181_p7 = scmp.eq.s32.totalorder %s178_s8, 0 }
   0xb   : > { %p1078_p8 = por %p200_p5, %p199_p3  ;;  %p252_p9 = scmp.lt.s32.totalorder %s989_s26, 3 }
   0xc   : > { %s1084_s10 = scalar_select %p181_p7, %s977_s23, %s183_s30  }
   0xd   : > { %p253_p10 = pnand %p764_p6, %p252_p9 }
   0xe   : > { %v901_v0 = vld [vmem:[%s1225_s3] sm:$0xff] (!%p253_p10)   ;;  %p293_p11 = scmp.lt.s32.totalorder (!%p253_p10), %s981_s24, 1  ;;  %v902_v1 = vld [vmem:[%s1225_s3 + $0x8] sm:$0xff] (!%p253_p10)   ;;  %v991_v5 = vmov (!%p253_p10), 0   ;;  %vm362_vm0 = vcmask (!%p253_p10), 261120   ;;  %v905_v25 = vld [vmem:[%s1226_s4 + $0x10] sm:$0xff] (!%p253_p10)  }
   0xf   : > { %256 = sbr.rel (%p253_p10) target bundleno = 615 (0x267), region = 44  ;;  %814 = vmatprep.subr.bf16.mxu0 (!%p253_p10), %v901_v0  ;;  %v903_v23 = vld [vmem:[%s1226_s4] sm:$0xff] (!%p253_p10)   ;;  %v904_v24 = vld [vmem:[%s1226_s4 + $0x8] sm:$0xff] (!%p253_p10)   ;;  %v906_v27 = vld [vmem:[%s1226_s4 + $0x18] sm:$0xff] (!%p253_p10)   ;;  %vm565_vm1 = vcmask (!%p253_p10), 523264   ;;  %s289_s27 = sand.u32 (!%p253_p10), 1, %s973_s22  }
  0x10   : > { %815 = vmatpush3.bf16.msra.mxu0 (!%p253_p10), %v901_v0  ;;  %826 = vmatprep.subr.bf16.mxu1 (!%p253_p10), %v903_v23  ;;  %s765_s28 = sshll.u32 (!%p253_p10), %s289_s27, 6  ;;  %s799_s12 = sshll.u32 (!%p253_p10), %s981_s24, 10 }
  0x11   : > { %816 = vmatprep.subr.bf16.mxu0 (!%p253_p10), %v902_v1  ;;  %827 = vmatpush3.bf16.msra.mxu1 (!%p253_p10), %v903_v23  ;;  %s291_s11 = scalar_lea.vmem (!%p253_p10), [#allocation2], %s765_s28  ;;  %s1170_s17 = scalar_lea.hbm (!%p253_p10), %s1228_s6, %s799_s12 }
  0x12   : > { %828 = vmatprep.subr.bf16.mxu1 (!%p253_p10), %v904_v24  ;;  %s663_s13 = sshll.u32 (!%p253_p10), %s291_s11, 4  ;;  %s1172_s13 = int_to_ptr.vmem [resolvable:$true] %s663_s13 }
  0x14   : > { %817 = vmatpush3.bf16.msra.mxu0 (!%p253_p10), %v902_v1 }
  0x15   : > { %829 = vmatpush3.bf16.msra.mxu1 (!%p253_p10), %v904_v24 }
  0x16   : > { %s1094_s15 = scalar_select %p293_p11, %s981_s24, 1  ;;  %830 = vmatprep.subr.bf16.mxu1 %v905_v25 }
  0x17   : > { %s1176_s24 = scalar_lea.sflag [#allocation3], %s289_s27 }
  0x18   : > { %s798_s16 = sshll.u32 %s1094_s15, 5  ;;  %s304_s14 = scalar_lea.vmem %s1223_s1, %s1094_s15 }
  0x19   : > { %s300_s19 = scalar_lea.vmem %s1222_s0, %s798_s16  ;;  %831 = vmatpush3.bf16.msra.mxu1 %v905_v25  ;;  %s307_s18 = scalar_lea.vmem %s1224_s2, %s1094_s15  ;;  %v778_v26 = vld [vmem:[%s304_s14] ss:$0 sm:$0xff] }
  0x1a   : > { %v1100_v2 = vld [vmem:[%s300_s19] sm:$0xf]  ;;  %v1102_v3 = vld [vmem:[%s300_s19 + $0x4] sm:$0xf]  ;;  %v1104_v4 = vld [vmem:[%s300_s19 + $0x8] sm:$0xf]  ;;  %832 = vmatprep.subr.bf16.mxu1 %v906_v27 }
  0x1b   : > { %v318_v6 = vmax.bf16 %v991_v5, %v1100_v2  ;;  %v319_v7 = vmax.bf16 %v991_v5, %v1102_v3  ;;  %v1108_v8 = vld [vmem:[%s300_s19 + $0xc] sm:$0xf]  ;;  %v320_v9 = vmax.bf16 %v991_v5, %v1104_v4  ;;  %v1111_v10 = vld [vmem:[%s300_s19 + $0x10] sm:$0xf]  ;;  %v1113_v11 = vld [vmem:[%s300_s19 + $0x14] sm:$0xf]  ;;  %v780_v1 = vcombine.low %v1100_v2, %v1102_v3 }
  0x1c   : > { %v321_v12 = vmax.bf16 %v991_v5, %v1108_v8  ;;  %v322_v13 = vmax.bf16 %v991_v5, %v1111_v10  ;;  %v323_v14 = vmax.bf16 %v991_v5, %v1113_v11  ;;  %v1118_v16 = vld [vmem:[%s300_s19 + $0x18] sm:$0xf]  ;;  %v1120_v17 = vld [vmem:[%s300_s19 + $0x1c] sm:$0xf]  ;;  %v779_v29 = vld [vmem:[%s307_s18] ss:$0 sm:$0xff] }
  0x1d   : > { %v768_v15 = vcombine.low %v318_v6, %v319_v7  ;;  %v324_v20 = vmax.bf16 %v991_v5, %v1118_v16  ;;  %v325_v21 = vmax.bf16 %v991_v5, %v1120_v17  ;;  %833 = vmatpush3.bf16.msra.mxu1 %v906_v27  ;;  %s992_s15 = smov 32   ;;  %v781_v7 = vcombine.low %v1104_v4, %v1108_v8  ;;  %v784_v4 = vld [vmem:[%s1227_s5] ss:$0 sm:$0xff]  ;;  %s911_s18 = scalar_lea.vmem %s1172_s13, 1024 }
  0x1e   : > { %v769_v18 = vcombine.low %v320_v9, %v321_v12  ;;  %v770_v19 = vcombine.low %v322_v13, %v323_v14  ;;  %v782_v13 = vcombine.low %v1111_v10, %v1113_v11  ;;  %v783_v3 = vcombine.low %v1118_v16, %v1120_v17  ;;  %p912_p12 = scmp.ne.s32.totalorder %s1172_s13, %s911_s18  ;;  %s993_s19 = smov [#allocation2]  }
  0x1f   : > { %818 = vmatprep.mubr.msk.bf16.mxu0 %vm362_vm0, %v768_v15  ;;  %v771_v22 = vcombine.low %v324_v20, %v325_v21  ;;  %s915_s20 = sshll.u32 %s993_s19, 4  ;;  %s916_s20 = int_to_ptr.vmem [resolvable:$false] %s915_s20 }
  0x20   : > { %819 = vmatmul.mubr.msk.bf16.vlgmr.msra.gmra.mrb[0].mxu0 %vm362_vm0, %v769_v18  ;;  %p913_p13 = pnand %p912_p12, %p1071_p4  ;;  %p918_p1 = scmp.lt.s32.totalorder %s1172_s13, %s916_s20 }
  0x21   : > { %822 = vmatprep.mubr.msk.bf16.mxu0 %vm362_vm0, %v770_v19 }
  0x22   : > { %p914_p0 = pneg %p913_p13 }
  0x28   : > { %823 = vmatmul.mubr.msk.bf16.gmra.mrb[4].mxu0 %vm362_vm0, %v771_v22 }
  0xf3   : > { %v820_v28 = vpop.f32.mrb[0].mxu0 }
  0xf4   : > { %v449_v30 = vmul.f32 %v820_v28, %v778_v26  ;;  %v409_v31 = vpop.f32.mrb[1].mxu0 }
  0xf5   : > { %v447_v32 = vmul.f32 %v778_v26, %v409_v31  ;;  %v821_v33 = vpop.f32.mrb[2].mxu0 }
  0xf6   : > { %v464_v34 = vadd.f32 %v779_v29, %v449_v30  ;;  %v450_v35 = vmul.f32 %v821_v33, %v778_v26  ;;  %v412_v36 = vpop.f32.mrb[3].mxu0 }
  0xf7   : > { %v462_v37 = vadd.f32 %v779_v29, %v447_v32  ;;  %v448_v38 = vmul.f32 %v778_v26, %v412_v36 }
  0xf8   : > { %v465_v39 = vadd.f32 %v779_v29, %v450_v35  ;;  %v472_v41 = vmax.f32 %v464_v34, 0.0 }
  0xf9   : > { %v463_v40 = vadd.f32 %v779_v29, %v448_v38  ;;  %v470_v43 = vmax.f32 %v462_v37, 0.0 }
  0xfa   : > { %v473_v42 = vmax.f32 %v465_v39, 0.0 }
  0xfb   : > { %v471_v44 = vmax.f32 %v463_v40, 0.0  ;;  %v824_v45 = vpop.f32.mrb[4].mxu0 }
  0xfc   : > { %v453_v46 = vmul.f32 %v824_v45, %v778_v26  ;;  %v425_v47 = vpop.f32.mrb[5].mxu0  ;;  %v479_v48 = vpack.c.bf16 %v473_v42, %v472_v41 }
  0xfd   : > { %v451_v49 = vmul.f32 %v778_v26, %v425_v47  ;;  %v825_v50 = vpop.f32.mrb[6].mxu0  ;;  %v478_v51 = vpack.c.bf16 %v471_v44, %v470_v43 }
  0xfe   : > { %v468_v52 = vadd.f32 %v779_v29, %v453_v46  ;;  %v454_v53 = vmul.f32 %v825_v50, %v778_v26  ;;  %v428_v54 = vpop.f32.mrb[7].mxu0 }
  0xff   : > { %v466_v55 = vadd.f32 %v779_v29, %v451_v49  ;;  %v452_v56 = vmul.f32 %v778_v26, %v428_v54  ;;  %506 = vrot.lane.b32.xlu0 %v478_v51, %s992_s15 }
 0x100   : > { %v469_v57 = vadd.f32 %v779_v29, %v454_v53  ;;  %v476_v59 = vmax.f32 %v468_v52, 0.0 }
 0x101   : > { %v467_v58 = vadd.f32 %v779_v29, %v452_v56  ;;  %v474_v61 = vmax.f32 %v466_v55, 0.0 }
 0x102   : > { %v477_v60 = vmax.f32 %v469_v57, 0.0 }
 0x103   : > { %v475_v62 = vmax.f32 %v467_v58, 0.0  ;;  %508 = vrot.lane.b32.xlu0 %v479_v48, %s992_s15 }
 0x104   : > { %v481_v63 = vpack.c.bf16 %v477_v60, %v476_v59 }
 0x105   : > { %v480_v0 = vpack.c.bf16 %v475_v62, %v474_v61 }
 0x107   : > { %510 = vrot.lane.b32.xlu1 %v480_v0, %s992_s15 }
 0x10b   : > { %512 = vrot.lane.b32.xlu1 %v481_v63, %s992_s15  ;;  %s917_s15 = scalar_lea.vmem %s916_s20, 2048 }
 0x10c   : > { %p919_p2 = scmp.lt.s32.totalorder %s917_s15, %s911_s18 }
 0x10e   : > { %p920_p3 = por %p919_p2, %p918_p1 }
 0x110   : > { %p921_p5 = pnand %p920_p3, %p914_p0 }
 0x171   : > { %v507_v5 = vpop.permute.xlu0 %506 }
 0x172   : > { %v516_v6 = vsel %vm362_vm0, %v780_v1, %v507_v5 }
 0x173   : > { %834 = vmatprep.mubr.msk.bf16.mxu1 %vm565_vm1, %v516_v6 }
 0x175   : > { %v509_v9 = vpop.permute.xlu0 %508 }
 0x176   : > { %v519_v12 = vsel %vm362_vm0, %v781_v7, %v509_v9 }
 0x177   : > { %835 = vmatmul.mubr.msk.bf16.vlgmr.msra.gmra.mrb[0].mxu1 %vm565_vm1, %v519_v12 }
 0x179   : > { %v511_v14 = vpop.permute.xlu1 %510 }
 0x17a   : > { %v522_v2 = vsel %vm362_vm0, %v782_v13, %v511_v14 }
 0x17b   : > { %838 = vmatprep.mubr.msk.bf16.mxu1 %vm565_vm1, %v522_v2 }
 0x17d   : > { %v513_v15 = vpop.permute.xlu1 %512 }
 0x17e   : > { %v525_v18 = vsel %vm362_vm0, %v783_v3, %v513_v15 }
 0x17f   : > { %839 = vmatmul.mubr.msk.bf16.gmra.mrb[4].mxu1 %vm565_vm1, %v525_v18 }
 0x24a   : > { %v836_v8 = vpop.f32.mrb[0].mxu1 }
 0x24b   : > { %v617_v10 = vadd.f32 %v836_v8, %v784_v4  ;;  %v608_v11 = vpop.f32.mrb[1].mxu1 }
 0x24c   : > { %v609_v19 = vadd.f32 %v784_v4, %v608_v11  ;;  %v837_v20 = vpop.f32.mrb[2].mxu1 }
 0x24d   : > { %641 = vst [vmem:[%s291_s11 + $0x10] sm:$0xff] %v617_v10  ;;  %v620_v16 = vadd.f32 %v837_v20, %v784_v4  ;;  %v611_v17 = vpop.f32.mrb[3].mxu1 }
 0x24e   : > { %639 = vst [vmem:[%s291_s11] sm:$0xff] %v609_v19  ;;  %v612_v21 = vadd.f32 %v784_v4, %v611_v17 }
 0x24f   : > { %642 = vst [vmem:[%s291_s11 + $0x18] sm:$0xff] %v620_v16 }
 0x250   : > { %640 = vst [vmem:[%s291_s11 + $0x8] sm:$0xff] %v612_v21 }
 0x252   : > { %v840_v22 = vpop.f32.mrb[4].mxu1 }
 0x253   : > { %v633_v23 = vadd.f32 %v840_v22, %v784_v4  ;;  %v624_v24 = vpop.f32.mrb[5].mxu1 }
 0x254   : > { %v625_v25 = vadd.f32 %v784_v4, %v624_v24  ;;  %v841_v26 = vpop.f32.mrb[6].mxu1 }
 0x255   : > { %645 = vst [vmem:[%s291_s11 + $0x30] sm:$0xff] %v633_v23  ;;  %v636_v27 = vadd.f32 %v841_v26, %v784_v4  ;;  %v627_v28 = vpop.f32.mrb[7].mxu1 }
 0x256   : > { %643 = vst [vmem:[%s291_s11 + $0x20] sm:$0xff] %v625_v25  ;;  %v628_v29 = vadd.f32 %v784_v4, %v627_v28 }
 0x257   : > { %646 = vst [vmem:[%s291_s11 + $0x38] sm:$0xff] %v636_v27 }
 0x258   : > { %644 = vst [vmem:[%s291_s11 + $0x28] sm:$0xff] %v628_v29 }
 0x259   : > { %924 = shalt.err (!%p921_p5)
}
 0x25a   : > { %s925_s27 = scalar_lea.hbm %s1170_s17, 1024  ;;  %s929_s8 = scalar_lea.hbm %s1228_s6, 2048 }
 0x25b   : > { %p926_p6 = scmp.ne.s32.totalorder %s1170_s17, %s925_s27  ;;  %p930_p10 = scmp.lt.u32.totalorder %s1170_s17, %s1228_s6 }
 0x25c   : > { %p931_p11 = scmp.lt.u32.totalorder %s929_s8, %s925_s27  ;;  %p933_p13 = scmp.lt.u32.totalorder %s925_s27, %s1170_s17 }
 0x25d   : > { %p927_p7 = pnand %p926_p6, %p1071_p4 }
 0x25e   : > { %p932_p12 = por %p931_p11, %p930_p10 }
 0x25f   : > { %p928_p9 = pneg %p927_p7 }
 0x260   : > { %p934_p0 = por %p933_p13, %p932_p12 }
 0x262   : > { %p935_p1 = pnand %p934_p0, %p928_p9 }
 0x264   : > { %938 = shalt.err (!%p935_p1)
}
 0x265   : > { %s994_s14 = smov 128   ;;  %s995_s16 = smov 8  }
 0x266   : > { %842 = dma.vmem_to_hbm [thread:$0]  (%p1071_p4), %s1172_s13, 1024, %s1170_s17, %s1176_s24, %s994_s14, %s994_s14, %s995_s16  }
 0x267 PF: > { %p848_p2 = scmp.ge.s32.totalorder %s989_s26, 2  ;;  %s678_s18 = sand.u32 1, %s969_s21  }
 0x268   : > { %s679_s19 = scalar_lea.sflag [#allocation3], %s678_s18 }
 0x269   : > { %p845_p3 = pnand %p848_p2, %p1078_p8 }
 0x26b   : > { %964 = dma.done.wait (!%p845_p3), %s679_s19, 1024  }
 0x26c   : > { %966 = vsyncadd (!%p845_p3), %s679_s19, 4294966272  ;;  %s19_s26 = sadd.s32 1, %s989_s26   ;;  %s1231_s21 = smov %s973_s22 }
 0x26d   : > { %p16_p5 = scmp.ge.s32.totalorder %s19_s26, 4   ;;  %s1232_s22 = smov %s977_s23 }
 0x26e   : > { %s1233_s23 = smov %s1084_s10  ;;  %s1234_s24 = smov %s985_s25 }
 0x26f   : > { %s1235_s25 = smov %s1237_s29  ;;  %18 = sbr.rel (!%p16_p5) target bundleno = 4 (0x4), region = 85 }
 0x276   :  { %684 = vsyncpa [#allocation3], 1 }
 0x277   :  { %686 = vsyncpa [#allocation3 + $0x1], 1 }

</bundles_post_ra>
